<compile_context>
chip_gen: v7x
topology: tpu7x:2x2x1
jax: 0.10.0
libtpu: 0.0.40
codegen_flags: <defaults>
</compile_context>

<pallas_src>
import jax
import jax.numpy as jnp
from jax import lax
from jax.experimental import pallas as pl
from jax.experimental.pallas import tpu as pltpu  # noqa: F401  (TPU backend)


def _round_up(x, m):
    return ((x + m - 1) // m) * m


def torch_model_forward(x_tokens, emb_table, w_ih, w_hh):
    """Pallas forward for TorchModel's inference path.

    x_tokens : (B, S) int32 token ids in [0, V)
    emb_table: (V, D) f32   nn.Embedding weight (row 0 zeroed for padding_idx=0)
    w_ih     : (H, D) f32   RNN weight_ih_l0
    w_hh     : (H, H) f32   RNN weight_hh_l0
    returns  : (B, H) f32   softmax(final hidden state)
    """
    B, S = x_tokens.shape
    V, D = emb_table.shape
    H = w_ih.shape[0]
    Hp = _round_up(H, 128)   # lane-dense hidden / class width
    Vp = _round_up(V, 128)   # lane-dense / aligned one-hot contraction width

    # ---- parameter prep (parameter-only work: done once, outside the kernel) ----
    # Hoisted input projection fused with the embedding table:
    #   emb_proj[v, :] = emb_table[v, :] @ W_ih^T   (so gather+project is ONE matmul in-kernel)
    emb_proj = jnp.zeros((Vp, Hp), jnp.float32)
    emb_proj = emb_proj.at[:V, :H].set(
        emb_table.astype(jnp.float32) @ w_ih.T.astype(jnp.float32))
    whh_t = jnp.zeros((Hp, Hp), jnp.float32).at[:H, :H].set(w_hh.T.astype(jnp.float32))

    # Lane-dense, time-major token ids: row t*B + b holds token (b, t), broadcast across
    # Vp lanes so the in-kernel compare against a lane iota is a plain VPU op.
    # NOTE: the one-hot gather yields an all-zero embedding for any id outside [0, V)
    # (nn.Embedding would error); callers must pass valid ids.
    tok_tm = x_tokens.T.reshape(S * B, 1).astype(jnp.int32)
    tok_bcast = jnp.broadcast_to(tok_tm, (S * B, Vp)).astype(jnp.int32)   # ~24 KB

    def kernel(tok_ref, embproj_ref, whh_ref, out_ref):
        # Fused embedding lookup + input projection: one MXU matmul.
        #   xproj = onehot(tokens) @ emb_proj        (S*B, Hp)
        tok = tok_ref[...]                                              # (S*B, Vp) i32
        vocab_ids = lax.broadcasted_iota(jnp.int32, (S * B, Vp), 1)
        onehot = (tok == vocab_ids).astype(jnp.float32)                 # (S*B, Vp)
        xproj = jnp.dot(onehot, embproj_ref[...],
                        preferred_element_type=jnp.float32)             # (S*B, Hp)

        whh = whh_ref[...]

        # Peeled first step: h0 = 0  =>  h1 = tanh(xproj_0)  (no matmul needed).
        h = jnp.tanh(xproj[0:B, :])
        # Fully unrolled recurrence for t = 1..S-1: only h @ W_hh^T + tanh on the
        # serial chain (padded lanes stay exactly 0 throughout).
        for t in range(1, S):                                           # S static -> unrolled
            x_t = xproj[t * B:(t + 1) * B, :]                           # static, tile-aligned
            h = jnp.tanh(x_t + jnp.dot(h, whh,
                                       preferred_element_type=jnp.float32))

        # Softmax over the true H classes (padded lanes masked to -inf -> exp == 0).
        lane = lax.broadcasted_iota(jnp.int32, (B, Hp), 1)
        h_m = jnp.where(lane < H, h, -jnp.inf)
        m = jnp.max(h_m, axis=-1, keepdims=True)
        e = jnp.exp(h_m - m)
        denom = jnp.sum(e, axis=-1, keepdims=True)
        out_ref[...] = e * pl.reciprocal(denom, approx=False)

    out_padded = pl.pallas_call(
        kernel,
        out_shape=jax.ShapeDtypeStruct((B, Hp), jnp.float32),
        in_specs=[
            pl.BlockSpec((S * B, Vp), lambda: (0, 0)),
            pl.BlockSpec((Vp, Hp), lambda: (0, 0)),
            pl.BlockSpec((Hp, Hp), lambda: (0, 0)),
        ],
        out_specs=pl.BlockSpec((B, Hp), lambda: (0, 0)),
    )(tok_bcast, emb_proj, whh_t)

    return out_padded[:, :H]


def reference_forward(x_tokens, emb_table, w_ih, w_hh):
    """Pure-JAX reference mirroring the PyTorch forward (inference path)."""
    emb = jnp.take(emb_table, x_tokens, axis=0)  # (B, S, D)
    B, S, D = emb.shape
    H = w_ih.shape[0]
    h = jnp.zeros((B, H), jnp.float32)
    for t in range(S):
        h = jnp.tanh(emb[:, t, :] @ w_ih.T + h @ w_hh.T)
    return jax.nn.softmax(h, axis=-1)


if __name__ == "__main__":
    # Small, deterministic configuration consistent with the module:
    vocab_size = 27        # len(vocab)
    vector_dim = 16        # embedding / RNN input dim
    sentence_length = 6    # seq length
    hidden = 5             # RNN hidden size (= number of classes)
    batch = 8

    key = jax.random.PRNGKey(0)
    k_emb, k_ih, k_hh, k_x = jax.random.split(key, 4)

    # nn.Embedding(len(vocab), vector_dim, padding_idx=0): zero out row 0.
    emb_table = jax.random.normal(k_emb, (vocab_size, vector_dim), jnp.float32) * 0.1
    emb_table = emb_table.at[0].set(0.0)

    # nn.RNN(vector_dim, 5, bias=False): weight_ih_l0 (H, D), weight_hh_l0 (H, H).
    w_ih = jax.random.normal(k_ih, (hidden, vector_dim), jnp.float32) * 0.2
    w_hh = jax.random.normal(k_hh, (hidden, hidden), jnp.float32) * 0.2

    # Integer token inputs (B, S), valid ids in [0, vocab_size).
    x_tokens = jax.random.randint(k_x, (batch, sentence_length), 0, vocab_size,
                                  dtype=jnp.int32)

    out = torch_model_forward(x_tokens, emb_table, w_ih, w_hh)
    out = jax.block_until_ready(out)

    ref = reference_forward(x_tokens, emb_table, w_ih, w_hh)
    assert out.shape == (batch, hidden)
    assert jnp.allclose(out, ref, atol=1e-5, rtol=1e-5)
    assert jnp.allclose(jnp.sum(out, axis=-1), 1.0, atol=1e-5)

    # TODO(synk): training path (cross_entropy loss when y is given) not implemented;
    # only the inference (softmax) branch of forward() is reproduced.
    print("KERNEL_OK")
</pallas_src>

<mosaic_0001>
module attributes {stable_mosaic.version = 11 : i64} {
  func.func @kernel(%arg0: memref<48x128xi32, #tpu.memory_space<vmem>>, %arg1: memref<128x128xf32, #tpu.memory_space<vmem>>, %arg2: memref<128x128xf32, #tpu.memory_space<vmem>>, %arg3: memref<8x128xf32, #tpu.memory_space<vmem>>) attributes {dimension_semantics = [], scalar_prefetch = 0 : i64, scratch_operands = 0 : i64, tpu.core_type = #tpu.core_type<tc>} {
    %c0 = arith.constant 0 : index
    %c0_0 = arith.constant 0 : index
    %0 = vector.load %arg0[%c0, %c0_0] : memref<48x128xi32, #tpu.memory_space<vmem>>, vector<48x128xi32>
    %1 = tpu.iota {dimensions = array<i32: 1>} : vector<48x128xi32>
    %2 = arith.cmpi eq, %0, %1 : vector<48x128xi32>
    %3 = arith.extui %2 : vector<48x128xi1> to vector<48x128xi32>
    %4 = arith.sitofp %3 : vector<48x128xi32> to vector<48x128xf32>
    %c0_1 = arith.constant 0 : index
    %c0_2 = arith.constant 0 : index
    %5 = vector.load %arg1[%c0_1, %c0_2] : memref<128x128xf32, #tpu.memory_space<vmem>>, vector<128x128xf32>
    %cst = arith.constant dense<0.000000e+00> : vector<48x128xf32>
    %6 = tpu.matmul %4, %5, %cst {dimension_numbers = #tpu.dot_dimension_numbers<[1], [0], [0], [1], [0, 0, 1, 1], [], []>} : vector<48x128xf32>, vector<128x128xf32>, vector<48x128xf32> -> vector<48x128xf32>
    %c0_3 = arith.constant 0 : index
    %c0_4 = arith.constant 0 : index
    %7 = vector.load %arg2[%c0_3, %c0_4] : memref<128x128xf32, #tpu.memory_space<vmem>>, vector<128x128xf32>
    %8 = vector.extract_strided_slice %6 {offsets = [0, 0], sizes = [8, 128], strides = [1, 1]} : vector<48x128xf32> to vector<8x128xf32>
    %9 = math.tanh %8 : vector<8x128xf32>
    %10 = vector.extract_strided_slice %6 {offsets = [8, 0], sizes = [8, 128], strides = [1, 1]} : vector<48x128xf32> to vector<8x128xf32>
    %cst_5 = arith.constant dense<0.000000e+00> : vector<8x128xf32>
    %11 = tpu.matmul %9, %7, %cst_5 {dimension_numbers = #tpu.dot_dimension_numbers<[1], [0], [0], [1], [0, 0, 1, 1], [], []>} : vector<8x128xf32>, vector<128x128xf32>, vector<8x128xf32> -> vector<8x128xf32>
    %12 = arith.addf %10, %11 : vector<8x128xf32>
    %13 = math.tanh %12 : vector<8x128xf32>
    %14 = vector.extract_strided_slice %6 {offsets = [16, 0], sizes = [8, 128], strides = [1, 1]} : vector<48x128xf32> to vector<8x128xf32>
    %cst_6 = arith.constant dense<0.000000e+00> : vector<8x128xf32>
    %15 = tpu.matmul %13, %7, %cst_6 {dimension_numbers = #tpu.dot_dimension_numbers<[1], [0], [0], [1], [0, 0, 1, 1], [], []>} : vector<8x128xf32>, vector<128x128xf32>, vector<8x128xf32> -> vector<8x128xf32>
    %16 = arith.addf %14, %15 : vector<8x128xf32>
    %17 = math.tanh %16 : vector<8x128xf32>
    %18 = vector.extract_strided_slice %6 {offsets = [24, 0], sizes = [8, 128], strides = [1, 1]} : vector<48x128xf32> to vector<8x128xf32>
    %cst_7 = arith.constant dense<0.000000e+00> : vector<8x128xf32>
    %19 = tpu.matmul %17, %7, %cst_7 {dimension_numbers = #tpu.dot_dimension_numbers<[1], [0], [0], [1], [0, 0, 1, 1], [], []>} : vector<8x128xf32>, vector<128x128xf32>, vector<8x128xf32> -> vector<8x128xf32>
    %20 = arith.addf %18, %19 : vector<8x128xf32>
    %21 = math.tanh %20 : vector<8x128xf32>
    %22 = vector.extract_strided_slice %6 {offsets = [32, 0], sizes = [8, 128], strides = [1, 1]} : vector<48x128xf32> to vector<8x128xf32>
    %cst_8 = arith.constant dense<0.000000e+00> : vector<8x128xf32>
    %23 = tpu.matmul %21, %7, %cst_8 {dimension_numbers = #tpu.dot_dimension_numbers<[1], [0], [0], [1], [0, 0, 1, 1], [], []>} : vector<8x128xf32>, vector<128x128xf32>, vector<8x128xf32> -> vector<8x128xf32>
    %24 = arith.addf %22, %23 : vector<8x128xf32>
    %25 = math.tanh %24 : vector<8x128xf32>
    %26 = vector.extract_strided_slice %6 {offsets = [40, 0], sizes = [8, 128], strides = [1, 1]} : vector<48x128xf32> to vector<8x128xf32>
    %cst_9 = arith.constant dense<0.000000e+00> : vector<8x128xf32>
    %27 = tpu.matmul %25, %7, %cst_9 {dimension_numbers = #tpu.dot_dimension_numbers<[1], [0], [0], [1], [0, 0, 1, 1], [], []>} : vector<8x128xf32>, vector<128x128xf32>, vector<8x128xf32> -> vector<8x128xf32>
    %28 = arith.addf %26, %27 : vector<8x128xf32>
    %29 = math.tanh %28 : vector<8x128xf32>
    %30 = tpu.iota {dimensions = array<i32: 1>} : vector<8x128xi32>
    %c5_i32 = arith.constant 5 : i32
    %31 = vector.broadcast %c5_i32 : i32 to vector<8x128xi32>
    %32 = arith.cmpi slt, %30, %31 : vector<8x128xi32>
    %cst_10 = arith.constant 0xFF800000 : f32
    %33 = vector.broadcast %cst_10 : f32 to vector<8x128xf32>
    %34 = arith.select %32, %29, %33 : vector<8x128xi1>, vector<8x128xf32>
    %cst_11 = arith.constant dense<0xFF800000> : vector<8xf32>
    %35 = vector.multi_reduction <maximumf>, %34, %cst_11 [1] : vector<8x128xf32> to vector<8xf32>
    %36 = vector.shape_cast %35 : vector<8xf32> to vector<8x1xf32>
    %37 = vector.broadcast %36 : vector<8x1xf32> to vector<8x128xf32>
    %38 = arith.subf %34, %37 : vector<8x128xf32>
    %39 = math.exp %38 : vector<8x128xf32>
    %cst_12 = arith.constant dense<0.000000e+00> : vector<8xf32>
    %40 = vector.multi_reduction <add>, %39, %cst_12 [1] : vector<8x128xf32> to vector<8xf32>
    %41 = vector.shape_cast %40 : vector<8xf32> to vector<8x1xf32>
    %42 = tpu.reciprocal %41 : vector<8x1xf32> -> vector<8x1xf32>
    %43 = vector.broadcast %42 : vector<8x1xf32> to vector<8x128xf32>
    %44 = arith.mulf %39, %43 : vector<8x128xf32>
    %c0_13 = arith.constant 0 : index
    %c0_14 = arith.constant 0 : index
    %45 = vector.load %arg3[%c0_13, %c0_14] : memref<8x128xf32, #tpu.memory_space<vmem>>, vector<8x128xf32>
    tpu.vector_store %arg3[%c0_13, %c0_14], %44 {strides = array<i32>} : memref<8x128xf32, #tpu.memory_space<vmem>>, vector<8x128xf32>,
    return
  }
}

</mosaic_0001>

<bundles_post_ra>
// kernel: tpu_custom_call.1
= control target key start
LH: loop header
LB: loop body
LE: loop exit
PB: predicated region body
PF: predicated region fallthrough
CT: control target
= control target key end

     0   :  { %8 = vsyncpa [#allocation3], 0  ;;  %s1420_s0 = inlined_call_operand.hbm [shape: s32[48,128], index: 0, kind: input, shape index: {}]   ;;  %s1421_s1 = inlined_call_operand.hbm [shape: f32[128,128], index: 1, kind: input, shape index: {}]   ;;  %s1422_s2 = inlined_call_operand.hbm [shape: f32[128,128], index: 2, kind: input, shape index: {}]   ;;  %s1423_s3 = inlined_call_operand.hbm [shape: f32[8,128], index: 3, kind: output, shape index: {}]  }
   0x1   :  { %9 = vsyncpa [#allocation6], 0 }
   0x2   :  { %10 = vsyncpa [#allocation4], 0  ;;  %s1205_s12 = smov [#allocation5]   ;;  %s1206_s14 = smov [#allocation2]  }
   0x3   :  { %s28_s13 = sshll.u32 %s1205_s12, 4  ;;  %s16_s15 = sshll.u32 %s1206_s14, 4  ;;  %s29_s13 = int_to_ptr.vmem [resolvable:$true] %s28_s13  ;;  %s1235_s15 = int_to_ptr.vmem [resolvable:$true] %s16_s15 }
   0x4   :  { %s1111_s18 = scalar_lea.hbm %s1421_s1, 2048 }
   0x5   :  { %p1112_p0 = scmp.ne.s32.totalorder %s1421_s1, %s1111_s18  ;;  %p1115_p1 = scmp.lt.u32.totalorder %s1111_s18, %s1421_s1 }
   0x7   :  { %p1117_p2 = pnand %p1115_p1, %p1112_p0 }
   0x9   :  { %1120 = shalt.err (!%p1117_p2)
}
   0xa   :  { %s1121_s23 = scalar_lea.vmem %s29_s13, 2048  ;;  %p1126_p4 = scmp.lt.s32.totalorder %s29_s13, %s29_s13 }
   0xb   :  { %p1122_p3 = scmp.ne.s32.totalorder %s29_s13, %s1121_s23  ;;  %p1127_p5 = scmp.lt.s32.totalorder %s1121_s23, %s1121_s23 }
   0xd   :  { %p1128_p6 = por %p1127_p5, %p1126_p4 }
   0xf   :  { %p1129_p7 = pnand %p1128_p6, %p1122_p3 }
  0x11   :  { %1132 = shalt.err (!%p1129_p7)
}
  0x12   :  { %s1207_s24 = smov 128   ;;  %s1208_s25 = smov 8  }
  0x13   :  { %34 = dma.hbm_to_vmem [thread:$0]  %s1421_s1, 2048, %s29_s13, [#allocation6], %s1207_s24, %s1207_s24, %s1208_s25  }
  0x14   :  { %s1133_s30 = scalar_lea.hbm %s1420_s0, 768 }
  0x15   :  { %p1134_p8 = scmp.ne.s32.totalorder %s1420_s0, %s1133_s30  ;;  %p1137_p9 = scmp.lt.u32.totalorder %s1133_s30, %s1420_s0 }
  0x17   :  { %p1139_p10 = pnand %p1137_p9, %p1134_p8 }
  0x19   :  { %1142 = shalt.err (!%p1139_p10)
}
  0x1a   :  { %s1143_s8 = scalar_lea.vmem %s1235_s15, 768  ;;  %p1148_p12 = scmp.lt.s32.totalorder %s1235_s15, %s1235_s15 }
  0x1b   :  { %p1144_p11 = scmp.ne.s32.totalorder %s1235_s15, %s1143_s8  ;;  %p1149_p13 = scmp.lt.s32.totalorder %s1143_s8, %s1143_s8 }
  0x1d   :  { %p1150_p0 = por %p1149_p13, %p1148_p12 }
  0x1f   :  { %p1151_p1 = pnand %p1150_p0, %p1144_p11 }
  0x21   :  { %1154 = shalt.err (!%p1151_p1)
}
  0x22   :  { %22 = dma.hbm_to_vmem [thread:$0]  %s1420_s0, 768, %s1235_s15, [#allocation3], %s1207_s24, %s1207_s24, %s1208_s25  }
  0x23   :  { %s1209_s10 = smov [#allocation7]   ;;  %s1155_s14 = scalar_lea.hbm %s1422_s2, 2048 }
  0x24   :  { %s40_s11 = sshll.u32 %s1209_s10, 4  ;;  %p1156_p2 = scmp.ne.s32.totalorder %s1422_s2, %s1155_s14  ;;  %s41_s11 = int_to_ptr.vmem [resolvable:$true] %s40_s11 }
  0x25   :  { %p1159_p3 = scmp.lt.u32.totalorder %s1155_s14, %s1422_s2 }
  0x27   :  { %p1161_p4 = pnand %p1159_p3, %p1156_p2 }
  0x29   :  { %1164 = shalt.err (!%p1161_p4)
}
  0x2a   :  { %s1165_s20 = scalar_lea.vmem %s41_s11, 2048  ;;  %p1170_p6 = scmp.lt.s32.totalorder %s41_s11, %s41_s11 }
  0x2b   :  { %p1166_p5 = scmp.ne.s32.totalorder %s41_s11, %s1165_s20  ;;  %p1171_p7 = scmp.lt.s32.totalorder %s1165_s20, %s1165_s20 }
  0x2d   :  { %p1172_p8 = por %p1171_p7, %p1170_p6 }
  0x2f   :  { %p1173_p9 = pnand %p1172_p8, %p1166_p5 }
  0x31   :  { %1176 = shalt.err (!%p1173_p9)
}
  0x32   :  { %46 = dma.hbm_to_vmem [thread:$0]  %s1422_s2, 2048, %s41_s11, [#allocation6], %s1207_s24, %s1207_s24, %s1208_s25  }
  0x33   :  { %1199 = dma.done.wait [#allocation3], 768  }
  0x34   :  { %1200 = vsyncadd [#allocation3], 4294966528 }
  0x35   :  { %1201 = dma.done.wait [#allocation6], 4096  }
  0x36   :  { %1202 = vsyncadd [#allocation6], 4294963200  ;;  %v1210_v0 = vmov 0.0|0.0   ;;  %v62_v1 = vlaneseq  ;;  %v82_v2 = vld [vmem:[#allocation5] sm:$0xff]  ;;  %v83_v3 = vld [vmem:[#allocation5 + $0x8] sm:$0xff]  ;;  %v1211_v18 = vmov 1.0  }
  0x37   :  { %965 = vmatprep.subr.bf16.mxu1 %v1210_v0  ;;  %v84_v4 = vld [vmem:[#allocation5 + $0x10] sm:$0xff]  ;;  %v933_v5 = vpack.c.bf16 %v83_v3, %v82_v2  ;;  %v85_v6 = vld [vmem:[#allocation5 + $0x18] sm:$0xff]  ;;  %v86_v8 = vld [vmem:[#allocation5 + $0x20] sm:$0xff]  ;;  %vm1212_vm2 = vmmov 0   ;;  %v1213_v53 = vmov 0.0   ;;  %s1214_s2 = smov [#allocation8]  }
  0x38   :  { %v937_v7 = vpack.c.bf16 %v85_v6, %v84_v4  ;;  %v87_v9 = vld [vmem:[#allocation5 + $0x28] sm:$0xff]  ;;  %v1288_v10 = vand.u32 127, %v62_v1  ;;  %v88_v12 = vld [vmem:[#allocation5 + $0x30] sm:$0xff]  ;;  %v89_v13 = vld [vmem:[#allocation5 + $0x38] sm:$0xff]  ;;  %790 = vmatprep.mubr.msk.f32.mxu1 %vm1212_vm2, %v1213_v53  ;;  %s588_s21 = sshll.u32 %s1214_s2, 4  ;;  %s589_s21 = int_to_ptr.vmem [resolvable:$true] %s588_s21 }
  0x39   :  { %934 = vmatprep.subr.bf16.mxu0 %v933_v5  ;;  %v941_v11 = vpack.c.bf16 %v87_v9, %v86_v8  ;;  %v56_v14 = vld [vmem:[#allocation2] sm:$0xff]  ;;  %v193_v15 = vld [vmem:[#allocation7] sm:$0xff]  ;;  %v194_v16 = vld [vmem:[#allocation7 + $0x8] sm:$0xff]  ;;  %v945_v21 = vpack.c.bf16 %v89_v13, %v88_v12  ;;  %s1177_s22 = scalar_lea.vmem %s589_s21, 128  ;;  %p1182_p11 = scmp.lt.s32.totalorder %s589_s21, %s589_s21 }
  0x3a   :  { %936 = vmatpush3.bf16.msra.mxu0 %v933_v5  ;;  %vm64_vm0 = vcmp.eq.s32.totalorder %v56_v14, %v1288_v10  ;;  %v195_v17 = vld [vmem:[#allocation7 + $0x10] sm:$0xff]  ;;  %v1292_v19 = vpack.c.bf16 %v194_v16, %v193_v15  ;;  %v196_v20 = vld [vmem:[#allocation7 + $0x18] sm:$0xff]  ;;  %v90_v22 = vld [vmem:[#allocation5 + $0x40] sm:$0xff]  ;;  %vm570_vm7 = vcmp.lt.s32.totalorder %v1288_v10, 5  ;;  %p1178_p10 = scmp.ne.s32.totalorder %s589_s21, %s1177_s22  ;;  %p1183_p12 = scmp.lt.s32.totalorder %s1177_s22, %s1177_s22 }
  0x3b   :  { %938 = vmatprep.subr.bf16.mxu0 %v937_v7  ;;  %749 = vmatprep.mubr.msk.f32.mxu0 %vm64_vm0, %v1211_v18  ;;  %v1295_v23 = vpack.c.bf16 %v196_v20, %v195_v17  ;;  %v91_v24 = vld [vmem:[#allocation5 + $0x48] sm:$0xff]  ;;  %v197_v25 = vld [vmem:[#allocation7 + $0x20] sm:$0xff]  ;;  %v92_v28 = vld [vmem:[#allocation5 + $0x50] sm:$0xff] }
  0x3c   :  { %967 = vmatpush3.bf16.msra.mxu1 %v1292_v19  ;;  %v198_v26 = vld [vmem:[#allocation7 + $0x28] sm:$0xff]  ;;  %v949_v27 = vpack.c.bf16 %v91_v24, %v90_v22  ;;  %v93_v30 = vld [vmem:[#allocation5 + $0x58] sm:$0xff]  ;;  %v199_v31 = vld [vmem:[#allocation7 + $0x30] sm:$0xff]  ;;  %p1184_p13 = por %p1183_p12, %p1182_p11 }
  0x3d   :  { %968 = vmatprep.subr.bf16.mxu1 %v1210_v0  ;;  %v1299_v29 = vpack.c.bf16 %v198_v26, %v197_v25  ;;  %v200_v32 = vld [vmem:[#allocation7 + $0x38] sm:$0xff]  ;;  %v953_v33 = vpack.c.bf16 %v93_v30, %v92_v28  ;;  %v94_v34 = vld [vmem:[#allocation5 + $0x60] sm:$0xff]  ;;  %v95_v36 = vld [vmem:[#allocation5 + $0x68] sm:$0xff] }
  0x3e   :  { %940 = vmatpush3.bf16.msra.mxu0 %v937_v7  ;;  %v1303_v35 = vpack.c.bf16 %v200_v32, %v199_v31  ;;  %v201_v37 = vld [vmem:[#allocation7 + $0x40] sm:$0xff]  ;;  %v202_v38 = vld [vmem:[#allocation7 + $0x48] sm:$0xff]  ;;  %v957_v39 = vpack.c.bf16 %v95_v36, %v94_v34  ;;  %v96_v41 = vld [vmem:[#allocation5 + $0x70] sm:$0xff]  ;;  %p1185_p0 = pnand %p1184_p13, %p1178_p10 }
  0x3f   :  { %942 = vmatprep.subr.bf16.mxu0 %v941_v11  ;;  %v1307_v40 = vpack.c.bf16 %v202_v38, %v201_v37  ;;  %v97_v42 = vld [vmem:[#allocation5 + $0x78] sm:$0xff]  ;;  %v203_v45 = vld [vmem:[#allocation7 + $0x50] sm:$0xff]  ;;  %v205_v48 = vld [vmem:[#allocation7 + $0x60] sm:$0xff] }
  0x40   :  { %970 = vmatpush3.bf16.msra.mxu1 %v1295_v23  ;;  %v961_v43 = vpack.c.bf16 %v97_v42, %v96_v41  ;;  %v57_v44 = vld [vmem:[#allocation2 + $0x8] sm:$0xff]  ;;  %v206_v49 = vld [vmem:[#allocation7 + $0x68] sm:$0xff]  ;;  %v207_v51 = vld [vmem:[#allocation7 + $0x70] sm:$0xff] }
  0x41   :  { %971 = vmatprep.subr.bf16.mxu1 %v1210_v0  ;;  %vm65_vm1 = vcmp.eq.s32.totalorder %v57_v44, %v1288_v10  ;;  %v204_v46 = vld [vmem:[#allocation7 + $0x58] sm:$0xff]  ;;  %v1330_v50 = vpack.c.bf16 %v206_v49, %v205_v48  ;;  %v58_v58 = vld [vmem:[#allocation2 + $0x10] sm:$0xff]  ;;  %v59_v59 = vld [vmem:[#allocation2 + $0x18] sm:$0xff] }
  0x42   :  { %944 = vmatpush3.bf16.msra.mxu0 %v941_v11  ;;  %v1325_v47 = vpack.c.bf16 %v204_v46, %v203_v45  ;;  %v208_v52 = vld [vmem:[#allocation7 + $0x78] sm:$0xff]  ;;  %vm66_vm3 = vcmp.eq.s32.totalorder %v58_v58, %v1288_v10  ;;  %v60_v60 = vld [vmem:[#allocation2 + $0x20] sm:$0xff]  ;;  %vm67_vm4 = vcmp.eq.s32.totalorder %v59_v59, %v1288_v10 }
  0x43   :  { %946 = vmatprep.subr.bf16.mxu0 %v945_v21  ;;  %v1336_v54 = vpack.c.bf16 %v208_v52, %v207_v51  ;;  %v61_v61 = vld [vmem:[#allocation2 + $0x28] sm:$0xff]  ;;  %vm68_vm5 = vcmp.eq.s32.totalorder %v60_v60, %v1288_v10 }
  0x44   :  { %973 = vmatpush3.bf16.msra.mxu1 %v1299_v29  ;;  %vm69_vm6 = vcmp.eq.s32.totalorder %v61_v61, %v1288_v10 }
  0x45   :  { %974 = vmatprep.subr.bf16.mxu1 %v1210_v0 }
  0x46   :  { %948 = vmatpush3.bf16.msra.mxu0 %v945_v21 }
  0x47   :  { %950 = vmatprep.subr.bf16.mxu0 %v949_v27 }
  0x48   :  { %976 = vmatpush3.bf16.msra.mxu1 %v1303_v35 }
  0x49   :  { %977 = vmatprep.subr.bf16.mxu1 %v1210_v0 }
  0x4a   :  { %952 = vmatpush3.bf16.msra.mxu0 %v949_v27 }
  0x4b   :  { %954 = vmatprep.subr.bf16.mxu0 %v953_v33 }
  0x4c   :  { %979 = vmatpush3.bf16.msra.mxu1 %v1307_v40 }
  0x4d   :  { %980 = vmatprep.subr.bf16.mxu1 %v1210_v0 }
  0x4e   :  { %956 = vmatpush3.bf16.msra.mxu0 %v953_v33 }
  0x4f   :  { %958 = vmatprep.subr.bf16.mxu0 %v957_v39 }
  0x50   :  { %982 = vmatpush3.bf16.msra.mxu1 %v1325_v47 }
  0x51   :  { %983 = vmatprep.subr.bf16.mxu1 %v1210_v0 }
  0x52   :  { %960 = vmatpush3.bf16.msra.mxu0 %v957_v39 }
  0x53   :  { %962 = vmatprep.subr.bf16.mxu0 %v961_v43 }
  0x54   :  { %985 = vmatpush3.bf16.msra.mxu1 %v1330_v50 }
  0x55   :  { %986 = vmatprep.subr.bf16.mxu1 %v1210_v0 }
  0x56   :  { %964 = vmatpush3.bf16.msra.mxu0 %v961_v43 }
  0x57   :  { %989 = vmatprep.subr.bf16.mxu0 %v1210_v0 }
  0x58   :  { %988 = vmatpush3.bf16.msra.mxu1 %v1336_v54 }
  0x59   :  { %750 = vmatmul.mubr.msk.f32.vlgmr.msra.gmra.mrb[0].mxu0 %vm65_vm1, %v1211_v18  ;;  %1013 = vmatprep.subr.bf16.mxu1 %v1210_v0 }
  0x5a   :  { %991 = vmatpush3.bf16.msra.mxu0 %v1292_v19  ;;  %752 = vmatprep.mubr.msk.f32.mxu0 %vm66_vm3, %v1211_v18 }
  0x5b   :  { %992 = vmatprep.subr.bf16.mxu0 %v1210_v0 }
  0x5d   :  { %753 = vmatmul.mubr.msk.f32.gmra.mrb[2].mxu0 %vm67_vm4, %v1211_v18 }
  0x5e   :  { %994 = vmatpush3.bf16.msra.mxu0 %v1295_v23  ;;  %755 = vmatprep.mubr.msk.f32.mxu0 %vm68_vm5, %v1211_v18 }
  0x5f   :  { %995 = vmatprep.subr.bf16.mxu0 %v1210_v0 }
  0x61   :  { %756 = vmatmul.mubr.msk.f32.gmra.mrb[4].mxu0 %vm69_vm6, %v1211_v18 }
  0x62   :  { %997 = vmatpush3.bf16.msra.mxu0 %v1299_v29  ;;  %825 = vmatprep.mubr.msk.f32.mxu0 %vm1212_vm2, %v1213_v53 }
  0x63   :  { %998 = vmatprep.subr.bf16.mxu0 %v1210_v0 }
  0x66   :  { %1000 = vmatpush3.bf16.msra.mxu0 %v1303_v35 }
  0x67   :  { %1001 = vmatprep.subr.bf16.mxu0 %v1210_v0 }
  0x6a   :  { %1003 = vmatpush3.bf16.msra.mxu0 %v1307_v40 }
  0x6b   :  { %1004 = vmatprep.subr.bf16.mxu0 %v1210_v0 }
  0x6e   :  { %1006 = vmatpush3.bf16.msra.mxu0 %v1325_v47 }
  0x6f   :  { %1007 = vmatprep.subr.bf16.mxu0 %v1210_v0 }
  0x72   :  { %1009 = vmatpush3.bf16.msra.mxu0 %v1330_v50 }
  0x73   :  { %1010 = vmatprep.subr.bf16.mxu0 %v1210_v0 }
  0x76   :  { %1012 = vmatpush3.bf16.msra.mxu0 %v1336_v54 }
  0x77   :  { %1037 = vmatprep.subr.bf16.mxu0 %v1210_v0 }
 0x12c   :  { %v751_v55 = vpop.f32.mrb[0].mxu0 }
 0x12d   :  { %v164_v56 = vpop.f32.mrb[1].mxu0 }
 0x12e   :  { %1095 = vtanh.f32 %v164_v56 }
 0x130   :  { %v754_v3 = vpop.f32.mrb[2].mxu0 }
 0x131   :  { %v174_v4 = vpop.f32.mrb[3].mxu0 }
 0x134   :  { %v757_v5 = vpop.f32.mrb[4].mxu0 }
 0x135   :  { %v184_v6 = vpop.f32.mrb[5].mxu0 }
 0x138   :  { %v1096_v57 = vpop.eup %1095 }
 0x139   :  { %791 = vmatmul.mubr.f32.vlgmr.msra.gmra.mrb[0].mxu1 %v1096_v57 }
 0x13a   :  { %1015 = vmatpush3.bf16.msra.mxu1 %v1292_v19  ;;  %860 = vmatprep.mubr.msk.f32.mxu1 %vm1212_vm2, %v1213_v53 }
 0x13b   :  { %1016 = vmatprep.subr.bf16.mxu1 %v1210_v0 }
 0x13e   :  { %1018 = vmatpush3.bf16.msra.mxu1 %v1295_v23 }
 0x13f   :  { %1019 = vmatprep.subr.bf16.mxu1 %v1210_v0 }
 0x142   :  { %1021 = vmatpush3.bf16.msra.mxu1 %v1299_v29 }
 0x143   :  { %1022 = vmatprep.subr.bf16.mxu1 %v1210_v0 }
 0x146   :  { %1024 = vmatpush3.bf16.msra.mxu1 %v1303_v35 }
 0x147   :  { %1025 = vmatprep.subr.bf16.mxu1 %v1210_v0 }
 0x14a   :  { %1027 = vmatpush3.bf16.msra.mxu1 %v1307_v40 }
 0x14b   :  { %1028 = vmatprep.subr.bf16.mxu1 %v1210_v0 }
 0x14e   :  { %1030 = vmatpush3.bf16.msra.mxu1 %v1325_v47 }
 0x14f   :  { %1031 = vmatprep.subr.bf16.mxu1 %v1210_v0 }
 0x152   :  { %1033 = vmatpush3.bf16.msra.mxu1 %v1330_v50 }
 0x153   :  { %1034 = vmatprep.subr.bf16.mxu1 %v1210_v0 }
 0x156   :  { %1036 = vmatpush3.bf16.msra.mxu1 %v1336_v54 }
 0x157   :  { %1061 = vmatprep.subr.bf16.mxu1 %v1210_v0 }
 0x20c   :  { %v276_v62 = vpop.f32.mrb[0].mxu1 }
 0x20d   :  { %v280_v63 = vadd.f32 %v751_v55, %v276_v62  ;;  %v792_v1 = vpop.f32.mrb[1].mxu1 }
 0x20f   :  { %1097 = vtanh.f32 %v280_v63 }
 0x219   :  { %v1098_v2 = vpop.eup %1097 }
 0x21a   :  { %826 = vmatmul.mubr.f32.vlgmr.msra.gmra.mrb[6].mxu0 %v1098_v2 }
 0x21b   :  { %1039 = vmatpush3.bf16.msra.mxu0 %v1292_v19  ;;  %895 = vmatprep.mubr.msk.f32.mxu0 %vm1212_vm2, %v1213_v53 }
 0x21c   :  { %1040 = vmatprep.subr.bf16.mxu0 %v1210_v0 }
 0x21f   :  { %1042 = vmatpush3.bf16.msra.mxu0 %v1295_v23 }
 0x220   :  { %1043 = vmatprep.subr.bf16.mxu0 %v1210_v0 }
 0x223   :  { %1045 = vmatpush3.bf16.msra.mxu0 %v1299_v29 }
 0x224   :  { %1046 = vmatprep.subr.bf16.mxu0 %v1210_v0 }
 0x227   :  { %1048 = vmatpush3.bf16.msra.mxu0 %v1303_v35 }
 0x228   :  { %1049 = vmatprep.subr.bf16.mxu0 %v1210_v0 }
 0x22b   :  { %1051 = vmatpush3.bf16.msra.mxu0 %v1307_v40 }
 0x22c   :  { %1052 = vmatprep.subr.bf16.mxu0 %v1210_v0 }
 0x22f   :  { %1054 = vmatpush3.bf16.msra.mxu0 %v1325_v47 }
 0x230   :  { %1055 = vmatprep.subr.bf16.mxu0 %v1210_v0 }
 0x233   :  { %1057 = vmatpush3.bf16.msra.mxu0 %v1330_v50 }
 0x234   :  { %1058 = vmatprep.subr.bf16.mxu0 %v1210_v0 }
 0x237   :  { %1060 = vmatpush3.bf16.msra.mxu0 %v1336_v54 }
 0x2ed   :  { %v348_v7 = vpop.f32.mrb[6].mxu0 }
 0x2ee   :  { %v352_v8 = vadd.f32 %v348_v7, %v174_v4  ;;  %v827_v9 = vpop.f32.mrb[7].mxu0 }
 0x2f0   :  { %1099 = vtanh.f32 %v352_v8 }
 0x2fa   :  { %v1100_v11 = vpop.eup %1099 }
 0x2fb   :  { %861 = vmatmul.mubr.f32.vlgmr.msra.gmra.mrb[2].mxu1 %v1100_v11 }
 0x2fc   :  { %1063 = vmatpush3.bf16.msra.mxu1 %v1292_v19  ;;  %930 = vmatprep.mubr.msk.f32.mxu1 %vm1212_vm2, %v1213_v53 }
 0x2fd   :  { %1064 = vmatprep.subr.bf16.mxu1 %v1210_v0 }
 0x300   :  { %1066 = vmatpush3.bf16.msra.mxu1 %v1295_v23 }
 0x301   :  { %1067 = vmatprep.subr.bf16.mxu1 %v1210_v0 }
 0x304   :  { %1069 = vmatpush3.bf16.msra.mxu1 %v1299_v29 }
 0x305   :  { %1070 = vmatprep.subr.bf16.mxu1 %v1210_v0 }
 0x308   :  { %1072 = vmatpush3.bf16.msra.mxu1 %v1303_v35 }
 0x309   :  { %1073 = vmatprep.subr.bf16.mxu1 %v1210_v0 }
 0x30c   :  { %1075 = vmatpush3.bf16.msra.mxu1 %v1307_v40 }
 0x30d   :  { %1076 = vmatprep.subr.bf16.mxu1 %v1210_v0 }
 0x310   :  { %1078 = vmatpush3.bf16.msra.mxu1 %v1325_v47 }
 0x311   :  { %1079 = vmatprep.subr.bf16.mxu1 %v1210_v0 }
 0x314   :  { %1081 = vmatpush3.bf16.msra.mxu1 %v1330_v50 }
 0x315   :  { %1082 = vmatprep.subr.bf16.mxu1 %v1210_v0 }
 0x318   :  { %1084 = vmatpush3.bf16.msra.mxu1 %v1336_v54 }
 0x3ce   :  { %v420_v12 = vpop.f32.mrb[2].mxu1 }
 0x3cf   :  { %v424_v13 = vadd.f32 %v754_v3, %v420_v12  ;;  %v862_v14 = vpop.f32.mrb[3].mxu1 }
 0x3d1   :  { %1101 = vtanh.f32 %v424_v13 }
 0x3db   :  { %v1102_v15 = vpop.eup %1101 }
 0x3dc   :  { %896 = vmatmul.mubr.f32.vlgmr.msra.gmra.mrb[8].mxu0 %v1102_v15 }
 0x4af   :  { %v492_v16 = vpop.f32.mrb[8].mxu0 }
 0x4b0   :  { %v496_v17 = vadd.f32 %v492_v16, %v184_v6  ;;  %v897_v18 = vpop.f32.mrb[9].mxu0 }
 0x4b2   :  { %1103 = vtanh.f32 %v496_v17 }
 0x4bc   :  { %v1104_v19 = vpop.eup %1103 }
 0x4bd   :  { %931 = vmatmul.mubr.f32.vlgmr.msra.gmra.mrb[4].mxu1 %v1104_v19 }
 0x590   :  { %v564_v20 = vpop.f32.mrb[4].mxu1 }
 0x591   :  { %v568_v21 = vadd.f32 %v757_v5, %v564_v20  ;;  %v932_v22 = vpop.f32.mrb[5].mxu1 }
 0x593   :  { %1105 = vtanh.f32 %v568_v21 }
 0x59d   :  { %v1106_v0 = vpop.eup %1105 }
 0x59e   :  { %v571_v23 = vsel %vm570_vm7, %v1106_v0, -inf }
 0x59f   :  { %572 = vmax.xlane.f32.xlu0 %v571_v23 }
 0x62c   :  { %v573_v24 = vpop.xlane.xlu0 %572 }
 0x62d   :  { %v574_v25 = vsub.f32 %v571_v23, %v573_v24 }
 0x62f   :  { %v575_v26 = vmul.f32 1.442695, %v574_v25 }
 0x631   :  { %1107 = vpow2.f32 %v575_v26 }
 0x63b   :  { %v1108_v27 = vpop.eup %1107 }
 0x63c   :  { %577 = vadd.xlane.f32.xlu0 %v1108_v27 }
 0x6c9   :  { %v578_v28 = vpop.xlane.xlu0 %577 }
 0x6ca   :  { %1109 = vrcp.f32 %v578_v28 }
 0x6d4   :  { %v1110_v29 = vpop.eup %1109 }
 0x6d5   :  { %v580_v30 = vmul.f32 %v1110_v29, %v1108_v27 }
 0x6d7   :  { %581 = vst [vmem:[#allocation8] sm:$0xff] %v580_v30 }
 0x6d8   :  { %1188 = shalt.err (!%p1185_p0)
}
 0x6d9   :  { %s1189_s25 = scalar_lea.hbm %s1423_s3, 128 }
 0x6da   :  { %p1190_p1 = scmp.ne.s32.totalorder %s1423_s3, %s1189_s25  ;;  %p1193_p2 = scmp.lt.u32.totalorder %s1189_s25, %s1423_s3 }
 0x6dc   :  { %p1195_p3 = pnand %p1193_p2, %p1190_p1 }
 0x6de   :  { %1198 = shalt.err (!%p1195_p3)
}
 0x6df   :  { %591 = dma.vmem_to_hbm [thread:$0]  %s589_s21, 128, %s1423_s3, [#allocation4]  }
 0x6e0   :  { %1203 = dma.done.wait [#allocation4], 128  }
 0x6e1   :  { %1204 = vsyncadd [#allocation4], 4294967168 }
 0x6e2   :  { %595 = vsyncpa [#allocation3], 1 }
 0x6e3   :  { %596 = vsyncpa [#allocation6], 1 }
 0x6e4   :  { %597 = vsyncpa [#allocation4], 1 }

</bundles_post_ra>
